<compile_context>
chip_gen: v7x
topology: tpu7x:2x2x1
jax: 0.10.0
libtpu: 0.0.40
codegen_flags: <defaults>
</compile_context>

<pallas_src>
from functools import partial

import numpy as np
import jax
import jax.numpy as jnp
from jax.experimental import pallas as pl
from jax.experimental.pallas import tpu as pltpu


# ----------------------------- Pallas kernel ------------------------------ #

def actor_critic_kernel(
    x_ref,        # (TB, state_size)
    w1_ref,       # (state_size, h)
    w23_ref,      # (2h, h)  : rows [0:h]=w2, rows [h:2h]=w3
    wh1_ref,      # (h, 2h)  : [wa1 | wc1]
    wh2_ref,      # (2h, h)  : block-diag(wa2, wc2)
    wh3_ref,      # (h, A+1) : block-diag(wa3, wc3)
    vecs_ref,     # (12, width) packed bias/gamma/beta rows
    out_ref,      # (TB, A+1) : [softmax probs | value]
    *,
    hidden,
    action_size,
):
    h = hidden
    A = action_size
    f32 = jnp.float32

    def vrow(i, n):
        # row i of the packed vector table, first n lanes -> (1, n) broadcast row
        return vecs_ref[i:i + 1, :n]

    def layernorm(t, gi, bi, eps=1e-5):
        mu = jnp.mean(t, axis=-1, keepdims=True)
        cen = t - mu
        var = jnp.mean(cen * cen, axis=-1, keepdims=True)
        return cen * jax.lax.rsqrt(var + eps) * vrow(gi, h) + vrow(bi, h)

    relu = lambda t: jnp.maximum(t, 0.0)

    x = x_ref[...]

    # ----- shared trunk: (Linear -> LayerNorm -> ReLU) x 3 -----
    t = jnp.dot(x, w1_ref[...], preferred_element_type=f32) + vrow(0, h)
    t = relu(layernorm(t, 1, 2))
    t = jnp.dot(t, w23_ref[:h, :], preferred_element_type=f32) + vrow(3, h)
    t = relu(layernorm(t, 4, 5))
    t = jnp.dot(t, w23_ref[h:, :], preferred_element_type=f32) + vrow(6, h)
    t = relu(layernorm(t, 7, 8))

    # ----- fused actor|critic heads (packed / block-diagonal weights) -----
    hd = relu(jnp.dot(t, wh1_ref[...], preferred_element_type=f32) + vrow(9, 2 * h))
    hd = relu(jnp.dot(hd, wh2_ref[...], preferred_element_type=f32) + vrow(10, h))
    lv = jnp.dot(hd, wh3_ref[...], preferred_element_type=f32) + vrow(11, A + 1)

    # softmax over the first A columns; last column is the raw critic value
    col = jax.lax.broadcasted_iota(jnp.int32, lv.shape, 1)
    is_act = col < A
    masked = jnp.where(is_act, lv, -jnp.inf)
    m = jnp.max(masked, axis=-1, keepdims=True)
    e = jnp.exp(masked - m)                 # value column -> exp(-inf) = 0
    probs = e / jnp.sum(e, axis=-1, keepdims=True)
    out_ref[...] = jnp.where(is_act, probs, lv).astype(out_ref.dtype)


# --------------------------- parameter packing ----------------------------- #

def pack_params(params, hidden_size, action_size):
    h = hidden_size
    h2 = h // 2
    A = action_size
    f32 = jnp.float32

    w1 = params["w1"]                                              # (S, h)
    w23 = jnp.concatenate([params["w2"], params["w3"]], axis=0)    # (2h, h)
    wh1 = jnp.concatenate([params["wa1"], params["wc1"]], axis=1)  # (h, 2h)
    wh2 = jnp.block([[params["wa2"], jnp.zeros((h, h2), f32)],
                     [jnp.zeros((h, h2), f32), params["wc2"]]])    # (2h, h)
    wh3 = jnp.block([[params["wa3"], jnp.zeros((h2, 1), f32)],
                     [jnp.zeros((h2, A), f32), params["wc3"]]])    # (h, A+1)

    width = max(2 * h, A + 1)

    def row(v):
        v = jnp.reshape(v, (1, -1)).astype(f32)
        return jnp.pad(v, ((0, 0), (0, width - v.shape[1])))

    vecs = jnp.concatenate(
        [
            row(params["b1"]), row(params["g1"]), row(params["be1"]),
            row(params["b2"]), row(params["g2"]), row(params["be2"]),
            row(params["b3"]), row(params["g3"]), row(params["be3"]),
            row(jnp.concatenate([params["ba1"], params["bc1"]], axis=1)),
            row(jnp.concatenate([params["ba2"], params["bc2"]], axis=1)),
            row(jnp.concatenate([params["ba3"], params["bc3"]], axis=1)),
        ],
        axis=0,
    )                                                              # (12, width)
    return w1, w23, wh1, wh2, wh3, vecs


# ------------------------------ JAX wrapper -------------------------------- #

def _round_up(a, b):
    return (a + b - 1) // b * b


def actor_critic_forward(x, packed, *, action_size, hidden_size, block_b=512):
    B, S = x.shape
    A = action_size
    w1, w23, wh1, wh2, wh3, vecs = packed

    # batch tile: multiple of 8 sublanes, capped; pad batch so it divides evenly
    TB = min(block_b, _round_up(B, 8))
    Bp = _round_up(B, TB)
    if Bp != B:
        x = jnp.pad(x, ((0, Bp - B), (0, 0)))
    grid = (Bp // TB,)

    kernel = partial(actor_critic_kernel, hidden=hidden_size, action_size=A)
    const2d = lambda i: (0, 0)   # weights / vectors stay resident across grid steps

    out = pl.pallas_call(
        kernel,
        out_shape=jax.ShapeDtypeStruct((Bp, A + 1), jnp.float32),
        grid=grid,
        in_specs=[
            pl.BlockSpec((TB, S), lambda i: (i, 0)),
            pl.BlockSpec(w1.shape, const2d),
            pl.BlockSpec(w23.shape, const2d),
            pl.BlockSpec(wh1.shape, const2d),
            pl.BlockSpec(wh2.shape, const2d),
            pl.BlockSpec(wh3.shape, const2d),
            pl.BlockSpec(vecs.shape, const2d),
        ],
        out_specs=pl.BlockSpec((TB, A + 1), lambda i: (i, 0)),
        compiler_params=pltpu.CompilerParams(
            dimension_semantics=("parallel",)),
    )(x, w1, w23, wh1, wh2, wh3, vecs)

    out = out[:B]
    return out[:, :A], out[:, A:]


# --------------------------- parameter creation ---------------------------- #

def init_params(key, state_size, action_size, hidden_size):
    """Mirror the PyTorch module init: orthogonal(gain=sqrt(2)) weights,
    zero biases, LayerNorm gamma=1 / beta=0.  Weights stored [in, out]."""
    ortho = jax.nn.initializers.orthogonal(scale=np.sqrt(2.0))
    h = hidden_size
    h2 = hidden_size // 2
    shapes = {
        "w1": (state_size, h), "w2": (h, h), "w3": (h, h),
        "wa1": (h, h), "wa2": (h, h2), "wa3": (h2, action_size),
        "wc1": (h, h), "wc2": (h, h2), "wc3": (h2, 1),
    }
    params = {}
    keys = jax.random.split(key, len(shapes))
    for (name, shp), k in zip(sorted(shapes.items()), keys):
        params[name] = ortho(k, shp, jnp.float32)

    for wname in shapes:
        bname = wname.replace("w", "b", 1)
        params[bname] = jnp.zeros((1, shapes[wname][1]), jnp.float32)

    for i in (1, 2, 3):
        params[f"g{i}"] = jnp.ones((1, h), jnp.float32)
        params[f"be{i}"] = jnp.zeros((1, h), jnp.float32)
    return params


# ---------------------------- pure-JAX reference --------------------------- #

def reference_forward(x, params):
    def linear(t, w, b):
        return t @ w + b

    def layernorm(t, g, b, eps=1e-5):
        mu = jnp.mean(t, axis=-1, keepdims=True)
        var = jnp.mean((t - mu) ** 2, axis=-1, keepdims=True)
        return (t - mu) / jnp.sqrt(var + eps) * g + b

    relu = jax.nn.relu
    t = relu(layernorm(linear(x, params["w1"], params["b1"]), params["g1"], params["be1"]))
    t = relu(layernorm(linear(t, params["w2"], params["b2"]), params["g2"], params["be2"]))
    t = relu(layernorm(linear(t, params["w3"], params["b3"]), params["g3"], params["be3"]))
    a = relu(linear(t, params["wa1"], params["ba1"]))
    a = relu(linear(a, params["wa2"], params["ba2"]))
    probs = jax.nn.softmax(linear(a, params["wa3"], params["ba3"]), axis=-1)
    c = relu(linear(t, params["wc1"], params["bc1"]))
    c = relu(linear(c, params["wc2"], params["bc2"]))
    value = linear(c, params["wc3"], params["bc3"])
    return probs, value


# ---------------------------------- main ----------------------------------- #

if __name__ == "__main__":
    batch = 8
    state_size = 16
    action_size = 4
    hidden_size = 32

    key = jax.random.PRNGKey(0)
    pkey, xkey = jax.random.split(key)
    params = init_params(pkey, state_size, action_size, hidden_size)
    x = jax.random.normal(xkey, (batch, state_size), jnp.float32)

    packed = pack_params(params, hidden_size, action_size)
    probs, value = actor_critic_forward(
        x, packed, action_size=action_size, hidden_size=hidden_size)
    probs = jax.block_until_ready(probs)
    value = jax.block_until_ready(value)

    ref_probs, ref_value = reference_forward(x, params)
    np.testing.assert_allclose(np.asarray(probs), np.asarray(ref_probs),
                               rtol=1e-5, atol=1e-5)
    np.testing.assert_allclose(np.asarray(value), np.asarray(ref_value),
                               rtol=1e-5, atol=1e-5)
    assert probs.shape == (batch, action_size)
    assert value.shape == (batch, 1)

    print("KERNEL_OK")
</pallas_src>

<mosaic_0001>
module attributes {stable_mosaic.version = 11 : i64} {
  func.func @actor_critic_kernel(%arg0: i32, %arg1: memref<8x16xf32, #tpu.memory_space<vmem>>, %arg2: memref<16x32xf32, #tpu.memory_space<vmem>>, %arg3: memref<64x32xf32, #tpu.memory_space<vmem>>, %arg4: memref<32x64xf32, #tpu.memory_space<vmem>>, %arg5: memref<64x32xf32, #tpu.memory_space<vmem>>, %arg6: memref<32x5xf32, #tpu.memory_space<vmem>>, %arg7: memref<12x64xf32, #tpu.memory_space<vmem>>, %arg8: memref<8x5xf32, #tpu.memory_space<vmem>>) attributes {dimension_semantics = [#tpu.dimension_semantics<parallel>], iteration_bounds = array<i64: 1>, scalar_prefetch = 0 : i64, scratch_operands = 0 : i64, tpu.core_type = #tpu.core_type<tc>, window_params = [{transform_indices = @transform_0, window_bounds = array<i64: 8, 16>}, {pipeline_mode = #tpu.pipeline_mode<synchronous>, transform_indices = @transform_1, window_bounds = array<i64: 16, 32>}, {pipeline_mode = #tpu.pipeline_mode<synchronous>, transform_indices = @transform_2, window_bounds = array<i64: 64, 32>}, {pipeline_mode = #tpu.pipeline_mode<synchronous>, transform_indices = @transform_3, window_bounds = array<i64: 32, 64>}, {pipeline_mode = #tpu.pipeline_mode<synchronous>, transform_indices = @transform_4, window_bounds = array<i64: 64, 32>}, {pipeline_mode = #tpu.pipeline_mode<synchronous>, transform_indices = @transform_5, window_bounds = array<i64: 32, 5>}, {pipeline_mode = #tpu.pipeline_mode<synchronous>, transform_indices = @transform_6, window_bounds = array<i64: 12, 64>}, {transform_indices = @transform_7, window_bounds = array<i64: 8, 5>}]} {
    %c0 = arith.constant 0 : index
    %c0_0 = arith.constant 0 : index
    %0 = vector.load %arg1[%c0, %c0_0] : memref<8x16xf32, #tpu.memory_space<vmem>>, vector<8x16xf32>
    %c0_1 = arith.constant 0 : index
    %c0_2 = arith.constant 0 : index
    %1 = vector.load %arg2[%c0_1, %c0_2] : memref<16x32xf32, #tpu.memory_space<vmem>>, vector<16x32xf32>
    %cst = arith.constant dense<0.000000e+00> : vector<8x32xf32>
    %2 = tpu.matmul %0, %1, %cst {dimension_numbers = #tpu.dot_dimension_numbers<[1], [0], [0], [1], [0, 0, 1, 1], [], []>} : vector<8x16xf32>, vector<16x32xf32>, vector<8x32xf32> -> vector<8x32xf32>
    %c0_3 = arith.constant 0 : index
    %c0_4 = arith.constant 0 : index
    %3 = vector.load %arg7[%c0_3, %c0_4] : memref<12x64xf32, #tpu.memory_space<vmem>>, vector<1x32xf32>
    %4 = vector.broadcast %3 : vector<1x32xf32> to vector<8x32xf32>
    %5 = arith.addf %2, %4 : vector<8x32xf32>
    %cst_5 = arith.constant dense<0.000000e+00> : vector<8xf32>
    %6 = vector.multi_reduction <add>, %5, %cst_5 [1] : vector<8x32xf32> to vector<8xf32>
    %7 = vector.shape_cast %6 : vector<8xf32> to vector<8x1xf32>
    %cst_6 = arith.constant 3.200000e+01 : f32
    %8 = vector.broadcast %cst_6 : f32 to vector<8x1xf32>
    %9 = arith.divf %7, %8 : vector<8x1xf32>
    %10 = vector.broadcast %9 : vector<8x1xf32> to vector<8x32xf32>
    %11 = arith.subf %5, %10 : vector<8x32xf32>
    %12 = arith.mulf %11, %11 : vector<8x32xf32>
    %cst_7 = arith.constant dense<0.000000e+00> : vector<8xf32>
    %13 = vector.multi_reduction <add>, %12, %cst_7 [1] : vector<8x32xf32> to vector<8xf32>
    %14 = vector.shape_cast %13 : vector<8xf32> to vector<8x1xf32>
    %cst_8 = arith.constant 3.200000e+01 : f32
    %15 = vector.broadcast %cst_8 : f32 to vector<8x1xf32>
    %16 = arith.divf %14, %15 : vector<8x1xf32>
    %cst_9 = arith.constant 9.99999974E-6 : f32
    %17 = vector.broadcast %cst_9 : f32 to vector<8x1xf32>
    %18 = arith.addf %16, %17 : vector<8x1xf32>
    %19 = math.rsqrt %18 : vector<8x1xf32>
    %20 = vector.broadcast %19 : vector<8x1xf32> to vector<8x32xf32>
    %21 = arith.mulf %11, %20 : vector<8x32xf32>
    %c1 = arith.constant 1 : index
    %c0_10 = arith.constant 0 : index
    %22 = vector.load %arg7[%c1, %c0_10] : memref<12x64xf32, #tpu.memory_space<vmem>>, vector<1x32xf32>
    %23 = vector.broadcast %22 : vector<1x32xf32> to vector<8x32xf32>
    %24 = arith.mulf %21, %23 : vector<8x32xf32>
    %c2 = arith.constant 2 : index
    %c0_11 = arith.constant 0 : index
    %25 = vector.load %arg7[%c2, %c0_11] : memref<12x64xf32, #tpu.memory_space<vmem>>, vector<1x32xf32>
    %26 = vector.broadcast %25 : vector<1x32xf32> to vector<8x32xf32>
    %27 = arith.addf %24, %26 : vector<8x32xf32>
    %cst_12 = arith.constant 0.000000e+00 : f32
    %28 = vector.broadcast %cst_12 : f32 to vector<8x32xf32>
    %29 = arith.maximumf %27, %28 : vector<8x32xf32>
    %c0_13 = arith.constant 0 : index
    %c0_14 = arith.constant 0 : index
    %30 = vector.load %arg3[%c0_13, %c0_14] : memref<64x32xf32, #tpu.memory_space<vmem>>, vector<32x32xf32>
    %cst_15 = arith.constant dense<0.000000e+00> : vector<8x32xf32>
    %31 = tpu.matmul %29, %30, %cst_15 {dimension_numbers = #tpu.dot_dimension_numbers<[1], [0], [0], [1], [0, 0, 1, 1], [], []>} : vector<8x32xf32>, vector<32x32xf32>, vector<8x32xf32> -> vector<8x32xf32>
    %c3 = arith.constant 3 : index
    %c0_16 = arith.constant 0 : index
    %32 = vector.load %arg7[%c3, %c0_16] : memref<12x64xf32, #tpu.memory_space<vmem>>, vector<1x32xf32>
    %33 = vector.broadcast %32 : vector<1x32xf32> to vector<8x32xf32>
    %34 = arith.addf %31, %33 : vector<8x32xf32>
    %cst_17 = arith.constant dense<0.000000e+00> : vector<8xf32>
    %35 = vector.multi_reduction <add>, %34, %cst_17 [1] : vector<8x32xf32> to vector<8xf32>
    %36 = vector.shape_cast %35 : vector<8xf32> to vector<8x1xf32>
    %cst_18 = arith.constant 3.200000e+01 : f32
    %37 = vector.broadcast %cst_18 : f32 to vector<8x1xf32>
    %38 = arith.divf %36, %37 : vector<8x1xf32>
    %39 = vector.broadcast %38 : vector<8x1xf32> to vector<8x32xf32>
    %40 = arith.subf %34, %39 : vector<8x32xf32>
    %41 = arith.mulf %40, %40 : vector<8x32xf32>
    %cst_19 = arith.constant dense<0.000000e+00> : vector<8xf32>
    %42 = vector.multi_reduction <add>, %41, %cst_19 [1] : vector<8x32xf32> to vector<8xf32>
    %43 = vector.shape_cast %42 : vector<8xf32> to vector<8x1xf32>
    %cst_20 = arith.constant 3.200000e+01 : f32
    %44 = vector.broadcast %cst_20 : f32 to vector<8x1xf32>
    %45 = arith.divf %43, %44 : vector<8x1xf32>
    %cst_21 = arith.constant 9.99999974E-6 : f32
    %46 = vector.broadcast %cst_21 : f32 to vector<8x1xf32>
    %47 = arith.addf %45, %46 : vector<8x1xf32>
    %48 = math.rsqrt %47 : vector<8x1xf32>
    %49 = vector.broadcast %48 : vector<8x1xf32> to vector<8x32xf32>
    %50 = arith.mulf %40, %49 : vector<8x32xf32>
    %c4 = arith.constant 4 : index
    %c0_22 = arith.constant 0 : index
    %51 = vector.load %arg7[%c4, %c0_22] : memref<12x64xf32, #tpu.memory_space<vmem>>, vector<1x32xf32>
    %52 = vector.broadcast %51 : vector<1x32xf32> to vector<8x32xf32>
    %53 = arith.mulf %50, %52 : vector<8x32xf32>
    %c5 = arith.constant 5 : index
    %c0_23 = arith.constant 0 : index
    %54 = vector.load %arg7[%c5, %c0_23] : memref<12x64xf32, #tpu.memory_space<vmem>>, vector<1x32xf32>
    %55 = vector.broadcast %54 : vector<1x32xf32> to vector<8x32xf32>
    %56 = arith.addf %53, %55 : vector<8x32xf32>
    %cst_24 = arith.constant 0.000000e+00 : f32
    %57 = vector.broadcast %cst_24 : f32 to vector<8x32xf32>
    %58 = arith.maximumf %56, %57 : vector<8x32xf32>
    %c32 = arith.constant 32 : index
    %c0_25 = arith.constant 0 : index
    %59 = vector.load %arg3[%c32, %c0_25] : memref<64x32xf32, #tpu.memory_space<vmem>>, vector<32x32xf32>
    %cst_26 = arith.constant dense<0.000000e+00> : vector<8x32xf32>
    %60 = tpu.matmul %58, %59, %cst_26 {dimension_numbers = #tpu.dot_dimension_numbers<[1], [0], [0], [1], [0, 0, 1, 1], [], []>} : vector<8x32xf32>, vector<32x32xf32>, vector<8x32xf32> -> vector<8x32xf32>
    %c6 = arith.constant 6 : index
    %c0_27 = arith.constant 0 : index
    %61 = vector.load %arg7[%c6, %c0_27] : memref<12x64xf32, #tpu.memory_space<vmem>>, vector<1x32xf32>
    %62 = vector.broadcast %61 : vector<1x32xf32> to vector<8x32xf32>
    %63 = arith.addf %60, %62 : vector<8x32xf32>
    %cst_28 = arith.constant dense<0.000000e+00> : vector<8xf32>
    %64 = vector.multi_reduction <add>, %63, %cst_28 [1] : vector<8x32xf32> to vector<8xf32>
    %65 = vector.shape_cast %64 : vector<8xf32> to vector<8x1xf32>
    %cst_29 = arith.constant 3.200000e+01 : f32
    %66 = vector.broadcast %cst_29 : f32 to vector<8x1xf32>
    %67 = arith.divf %65, %66 : vector<8x1xf32>
    %68 = vector.broadcast %67 : vector<8x1xf32> to vector<8x32xf32>
    %69 = arith.subf %63, %68 : vector<8x32xf32>
    %70 = arith.mulf %69, %69 : vector<8x32xf32>
    %cst_30 = arith.constant dense<0.000000e+00> : vector<8xf32>
    %71 = vector.multi_reduction <add>, %70, %cst_30 [1] : vector<8x32xf32> to vector<8xf32>
    %72 = vector.shape_cast %71 : vector<8xf32> to vector<8x1xf32>
    %cst_31 = arith.constant 3.200000e+01 : f32
    %73 = vector.broadcast %cst_31 : f32 to vector<8x1xf32>
    %74 = arith.divf %72, %73 : vector<8x1xf32>
    %cst_32 = arith.constant 9.99999974E-6 : f32
    %75 = vector.broadcast %cst_32 : f32 to vector<8x1xf32>
    %76 = arith.addf %74, %75 : vector<8x1xf32>
    %77 = math.rsqrt %76 : vector<8x1xf32>
    %78 = vector.broadcast %77 : vector<8x1xf32> to vector<8x32xf32>
    %79 = arith.mulf %69, %78 : vector<8x32xf32>
    %c7 = arith.constant 7 : index
    %c0_33 = arith.constant 0 : index
    %80 = vector.load %arg7[%c7, %c0_33] : memref<12x64xf32, #tpu.memory_space<vmem>>, vector<1x32xf32>
    %81 = vector.broadcast %80 : vector<1x32xf32> to vector<8x32xf32>
    %82 = arith.mulf %79, %81 : vector<8x32xf32>
    %c8 = arith.constant 8 : index
    %c0_34 = arith.constant 0 : index
    %83 = vector.load %arg7[%c8, %c0_34] : memref<12x64xf32, #tpu.memory_space<vmem>>, vector<1x32xf32>
    %84 = vector.broadcast %83 : vector<1x32xf32> to vector<8x32xf32>
    %85 = arith.addf %82, %84 : vector<8x32xf32>
    %cst_35 = arith.constant 0.000000e+00 : f32
    %86 = vector.broadcast %cst_35 : f32 to vector<8x32xf32>
    %87 = arith.maximumf %85, %86 : vector<8x32xf32>
    %c0_36 = arith.constant 0 : index
    %c0_37 = arith.constant 0 : index
    %88 = vector.load %arg4[%c0_36, %c0_37] : memref<32x64xf32, #tpu.memory_space<vmem>>, vector<32x64xf32>
    %cst_38 = arith.constant dense<0.000000e+00> : vector<8x64xf32>
    %89 = tpu.matmul %87, %88, %cst_38 {dimension_numbers = #tpu.dot_dimension_numbers<[1], [0], [0], [1], [0, 0, 1, 1], [], []>} : vector<8x32xf32>, vector<32x64xf32>, vector<8x64xf32> -> vector<8x64xf32>
    %c9 = arith.constant 9 : index
    %c0_39 = arith.constant 0 : index
    %90 = vector.load %arg7[%c9, %c0_39] : memref<12x64xf32, #tpu.memory_space<vmem>>, vector<1x64xf32>
    %91 = vector.broadcast %90 : vector<1x64xf32> to vector<8x64xf32>
    %92 = arith.addf %89, %91 : vector<8x64xf32>
    %cst_40 = arith.constant 0.000000e+00 : f32
    %93 = vector.broadcast %cst_40 : f32 to vector<8x64xf32>
    %94 = arith.maximumf %92, %93 : vector<8x64xf32>
    %c0_41 = arith.constant 0 : index
    %c0_42 = arith.constant 0 : index
    %95 = vector.load %arg5[%c0_41, %c0_42] : memref<64x32xf32, #tpu.memory_space<vmem>>, vector<64x32xf32>
    %cst_43 = arith.constant dense<0.000000e+00> : vector<8x32xf32>
    %96 = tpu.matmul %94, %95, %cst_43 {dimension_numbers = #tpu.dot_dimension_numbers<[1], [0], [0], [1], [0, 0, 1, 1], [], []>} : vector<8x64xf32>, vector<64x32xf32>, vector<8x32xf32> -> vector<8x32xf32>
    %c10 = arith.constant 10 : index
    %c0_44 = arith.constant 0 : index
    %97 = vector.load %arg7[%c10, %c0_44] : memref<12x64xf32, #tpu.memory_space<vmem>>, vector<1x32xf32>
    %98 = vector.broadcast %97 : vector<1x32xf32> to vector<8x32xf32>
    %99 = arith.addf %96, %98 : vector<8x32xf32>
    %cst_45 = arith.constant 0.000000e+00 : f32
    %100 = vector.broadcast %cst_45 : f32 to vector<8x32xf32>
    %101 = arith.maximumf %99, %100 : vector<8x32xf32>
    %c0_46 = arith.constant 0 : index
    %c0_47 = arith.constant 0 : index
    %102 = vector.load %arg6[%c0_46, %c0_47] : memref<32x5xf32, #tpu.memory_space<vmem>>, vector<32x5xf32>
    %cst_48 = arith.constant dense<0.000000e+00> : vector<8x5xf32>
    %103 = tpu.matmul %101, %102, %cst_48 {dimension_numbers = #tpu.dot_dimension_numbers<[1], [0], [0], [1], [0, 0, 1, 1], [], []>} : vector<8x32xf32>, vector<32x5xf32>, vector<8x5xf32> -> vector<8x5xf32>
    %c11 = arith.constant 11 : index
    %c0_49 = arith.constant 0 : index
    %104 = vector.load %arg7[%c11, %c0_49] : memref<12x64xf32, #tpu.memory_space<vmem>>, vector<1x5xf32>
    %105 = vector.broadcast %104 : vector<1x5xf32> to vector<8x5xf32>
    %106 = arith.addf %103, %105 : vector<8x5xf32>
    %107 = tpu.iota {dimensions = array<i32: 1>} : vector<8x5xi32>
    %c4_i32 = arith.constant 4 : i32
    %108 = vector.broadcast %c4_i32 : i32 to vector<8x5xi32>
    %109 = arith.cmpi slt, %107, %108 : vector<8x5xi32>
    %cst_50 = arith.constant 0xFF800000 : f32
    %110 = vector.broadcast %cst_50 : f32 to vector<8x5xf32>
    %111 = arith.select %109, %106, %110 : vector<8x5xi1>, vector<8x5xf32>
    %cst_51 = arith.constant dense<0xFF800000> : vector<8xf32>
    %112 = vector.multi_reduction <maximumf>, %111, %cst_51 [1] : vector<8x5xf32> to vector<8xf32>
    %113 = vector.shape_cast %112 : vector<8xf32> to vector<8x1xf32>
    %114 = vector.broadcast %113 : vector<8x1xf32> to vector<8x5xf32>
    %115 = arith.subf %111, %114 : vector<8x5xf32>
    %116 = math.exp %115 : vector<8x5xf32>
    %cst_52 = arith.constant dense<0.000000e+00> : vector<8xf32>
    %117 = vector.multi_reduction <add>, %116, %cst_52 [1] : vector<8x5xf32> to vector<8xf32>
    %118 = vector.shape_cast %117 : vector<8xf32> to vector<8x1xf32>
    %119 = vector.broadcast %118 : vector<8x1xf32> to vector<8x5xf32>
    %120 = arith.divf %116, %119 : vector<8x5xf32>
    %121 = arith.select %109, %120, %106 : vector<8x5xi1>, vector<8x5xf32>
    %c0_53 = arith.constant 0 : index
    %c0_54 = arith.constant 0 : index
    %122 = vector.load %arg8[%c0_53, %c0_54] : memref<8x5xf32, #tpu.memory_space<vmem>>, vector<8x5xf32>
    tpu.vector_store %arg8[%c0_53, %c0_54], %121 {strides = array<i32>} : memref<8x5xf32, #tpu.memory_space<vmem>>, vector<8x5xf32>,
    return
  }
  func.func @transform_0(%arg0: i32) -> (i32, i32) {
    %c0_i32 = arith.constant 0 : i32
    %c0_i32_0 = arith.constant 0 : i32
    return %arg0, %c0_i32 : i32, i32
  }
  func.func @transform_1(%arg0: i32) -> (i32, i32) {
    %c0_i32 = arith.constant 0 : i32
    %c0_i32_0 = arith.constant 0 : i32
    %c0_i32_1 = arith.constant 0 : i32
    return %c0_i32, %c0_i32_0 : i32, i32
  }
  func.func @transform_2(%arg0: i32) -> (i32, i32) {
    %c0_i32 = arith.constant 0 : i32
    %c0_i32_0 = arith.constant 0 : i32
    %c0_i32_1 = arith.constant 0 : i32
    return %c0_i32, %c0_i32_0 : i32, i32
  }
  func.func @transform_3(%arg0: i32) -> (i32, i32) {
    %c0_i32 = arith.constant 0 : i32
    %c0_i32_0 = arith.constant 0 : i32
    %c0_i32_1 = arith.constant 0 : i32
    return %c0_i32, %c0_i32_0 : i32, i32
  }
  func.func @transform_4(%arg0: i32) -> (i32, i32) {
    %c0_i32 = arith.constant 0 : i32
    %c0_i32_0 = arith.constant 0 : i32
    %c0_i32_1 = arith.constant 0 : i32
    return %c0_i32, %c0_i32_0 : i32, i32
  }
  func.func @transform_5(%arg0: i32) -> (i32, i32) {
    %c0_i32 = arith.constant 0 : i32
    %c0_i32_0 = arith.constant 0 : i32
    %c0_i32_1 = arith.constant 0 : i32
    return %c0_i32, %c0_i32_0 : i32, i32
  }
  func.func @transform_6(%arg0: i32) -> (i32, i32) {
    %c0_i32 = arith.constant 0 : i32
    %c0_i32_0 = arith.constant 0 : i32
    %c0_i32_1 = arith.constant 0 : i32
    return %c0_i32, %c0_i32_0 : i32, i32
  }
  func.func @transform_7(%arg0: i32) -> (i32, i32) {
    %c0_i32 = arith.constant 0 : i32
    %c0_i32_0 = arith.constant 0 : i32
    return %arg0, %c0_i32 : i32, i32
  }
}

</mosaic_0001>

<bundles_post_ra>
// kernel: tpu_custom_call.1
= control target key start
LH: loop header
LB: loop body
LE: loop exit
PB: predicated region body
PF: predicated region fallthrough
CT: control target
= control target key end

     0   :  { %v835_v2 = vmov 0.0|0.0   ;;  %vm836_vm0 = vmmov 0   ;;  %v837_v4 = vmov 0.0   ;;  %s1048_s0 = inlined_call_operand.vmem [shape: f32[8,16], index: 0, kind: input, shape index: {}]   ;;  %s1049_s1 = inlined_call_operand.vmem [shape: f32[16,32], index: 1, kind: input, shape index: {}]   ;;  %s1050_s2 = inlined_call_operand.vmem [shape: f32[64,32], index: 2, kind: input, shape index: {}]   ;;  %s1051_s3 = inlined_call_operand.vmem [shape: f32[32,64], index: 3, kind: input, shape index: {}]   ;;  %s1052_s4 = inlined_call_operand.vmem [shape: f32[64,32], index: 4, kind: input, shape index: {}]   ;;  %s1053_s5 = inlined_call_operand.vmem [shape: f32[32,5], index: 5, kind: input, shape index: {}]   ;;  %s1054_s6 = inlined_call_operand.vmem [shape: f32[12,64], index: 6, kind: input, shape index: {}]   ;;  %s1055_s7 = inlined_call_operand.hbm [shape: f32[8,5], index: 7, kind: output, shape index: {}]  }
   0x1   :  { %v28_v0 = vld [vmem:[%s1049_s1] sm:$0xff]  ;;  %v29_v1 = vld [vmem:[%s1049_s1 + $0x8] sm:$0xff]  ;;  %758 = vmatprep.subr.bf16.mxu0 %v835_v2  ;;  %692 = vmatprep.mubr.msk.f32.mxu0 %vm836_vm0, %v837_v4 }
   0x2   :  { %v759_v3 = vpack.c.bf16 %v29_v1, %v28_v0 }
   0x3   :  { %12 = vsyncpa [#allocation3], 0  ;;  %761 = vmatprep.subr.bf16.mxu1 %v835_v2  ;;  %703 = vmatprep.mubr.msk.f32.mxu1 %vm836_vm0, %v837_v4  ;;  %v27_v5 = vld [vmem:[%s1048_s0] sm:$0xff]  ;;  %vm35_vm1 = vcmask 130048   ;;  %vm109_vm2 = vcmask 261120   ;;  %v138_v17 = vld [vmem:[%s1050_s2 + $0x8] sm:$0xff] }
   0x4   :  { %760 = vmatpush3.bf16.msra.mxu0 %v759_v3  ;;  %v638_v6 = vld [vmem:[%s1054_s6] ss:$0 sm:$0xff]  ;;  %v139_v18 = vld [vmem:[%s1050_s2 + $0x10] sm:$0xff]  ;;  %v140_v20 = vld [vmem:[%s1050_s2 + $0x18] sm:$0xff]  ;;  %vm449_vm3 = vcmask 523264   ;;  %vm610_vm5 = vcmask 39936  }
   0x5   :  { %767 = vmatprep.subr.bf16.mxu0 %v835_v2  ;;  %v137_v16 = vld [vmem:[%s1050_s2] sm:$0xff]  ;;  %v765_v21 = vpack.c.bf16 %v140_v20, %v139_v18  ;;  %v246_v43 = vld [vmem:[%s1050_s2 + $0x28] sm:$0xff]  ;;  %v247_v45 = vld [vmem:[%s1050_s2 + $0x30] sm:$0xff] }
   0x6   :  { %v762_v19 = vpack.c.bf16 %v138_v17, %v137_v16  ;;  %v640_v26 = vld [vmem:[%s1054_s6 + $0x1] ss:$0 sm:$0xff]  ;;  %v641_v28 = vld [vmem:[%s1054_s6 + $0x2] ss:$0 sm:$0xff]  ;;  %v642_v32 = vld [vmem:[%s1054_s6 + $0x3] ss:$0 sm:$0xff] }
   0x7   :  { %693 = vmatmul.mubr.msk.f32.vlgmr.msra.gmra.mrb[0].mxu0 %vm35_vm1, %v27_v5  ;;  %v245_v42 = vld [vmem:[%s1050_s2 + $0x20] sm:$0xff]  ;;  %v248_v46 = vld [vmem:[%s1050_s2 + $0x38] sm:$0xff] }
   0x8   :  { %714 = vmatprep.mubr.msk.f32.mxu0 %vm836_vm0, %v837_v4  ;;  %763 = vmatpush3.bf16.msra.mxu1 %v762_v19  ;;  %v768_v44 = vpack.c.bf16 %v246_v43, %v245_v42  ;;  %v771_v47 = vpack.c.bf16 %v248_v46, %v247_v45  ;;  %v644_v52 = vld [vmem:[%s1054_s6 + $0x4] ss:$0 sm:$0xff]  ;;  %v645_v54 = vld [vmem:[%s1054_s6 + $0x5] ss:$0 sm:$0xff]  ;;  %v646_v58 = vld [vmem:[%s1054_s6 + $0x6] ss:$0 sm:$0xff] }
   0x9   :  { %764 = vmatprep.subr.bf16.mxu1 %v835_v2  ;;  %v439_v16 = vld [vmem:[%s1052_s4 + $0x18] sm:$0xff]  ;;  %v440_v18 = vld [vmem:[%s1052_s4 + $0x20] sm:$0xff]  ;;  %v441_v19 = vld [vmem:[%s1052_s4 + $0x28] sm:$0xff] }
   0xa   :  { %769 = vmatpush3.bf16.msra.mxu0 %v768_v44  ;;  %v786_v20 = vpack.c.bf16 %v441_v19, %v440_v18  ;;  %v527_v42 = vld [vmem:[%s1053_s5 + $0x18] sm:$0xff] }
   0xb   :  { %770 = vmatprep.subr.bf16.mxu0 %v835_v2 }
   0xc   :  { %766 = vmatpush3.bf16.msra.mxu1 %v765_v21 }
   0xd   :  { %773 = vmatprep.subr.bf16.mxu1 %v835_v2 }
   0xe   :  { %772 = vmatpush3.bf16.msra.mxu0 %v771_v47 }
   0xf   :  { %779 = vmatprep.subr.bf16.mxu0 %v835_v2 }
  0xda   :  { %v105_v7 = vpop.f32.mrb[0].mxu0 }
  0xdb   :  { %v106_v8 = vadd.f32 %v638_v6, %v105_v7  ;;  %v694_v9 = vpop.f32.mrb[1].mxu0  ;;  %v353_v6 = vld [vmem:[%s1051_s3] sm:$0xff]  ;;  %v354_v7 = vld [vmem:[%s1051_s3 + $0x8] sm:$0xff] }
  0xdc   :  { %v355_v9 = vld [vmem:[%s1051_s3 + $0x10] sm:$0xff] }
  0xdd   :  { %v110_v10 = vsel %vm109_vm2, %v106_v8, 0.0 }
  0xde   :  { %111 = vadd.xlane.f32.xlu0 %v110_v10  ;;  %v356_v10 = vld [vmem:[%s1051_s3 + $0x18] sm:$0xff] }
 0x16b   :  { %v112_v11 = vpop.xlane.xlu0 %111 }
 0x16c   :  { %v114_v12 = vmul.f32 0.03125, %v112_v11  ;;  %v777_v11 = vpack.c.bf16 %v356_v10, %v355_v9 }
 0x16e   :  { %v115_v13 = vsub.f32 %v106_v8, %v114_v12  ;;  %v774_v8 = vpack.c.bf16 %v354_v7, %v353_v6  ;;  %v436_v12 = vld [vmem:[%s1052_s4] sm:$0xff] }
 0x170   :  { %v116_v14 = vmul.f32 %v115_v13, %v115_v13 }
 0x172   :  { %v117_v15 = vsel %vm109_vm2, %v116_v14, 0.0  ;;  %v438_v14 = vld [vmem:[%s1052_s4 + $0x10] sm:$0xff] }
 0x173   :  { %118 = vadd.xlane.f32.xlu0 %v117_v15  ;;  %v783_v17 = vpack.c.bf16 %v439_v16, %v438_v14 }
 0x200   :  { %v119_v22 = vpop.xlane.xlu0 %118 }
 0x201   :  { %v120_v23 = vmul.f32 0.03125, %v119_v22 }
 0x203   :  { %v121_v24 = vadd.f32 1e-05, %v120_v23 }
 0x205   :  { %801 = vrsqrt.f32 %v121_v24 }
 0x20f   :  { %v802_v25 = vpop.eup %801 }
 0x210   :  { %v123_v27 = vmul.f32 %v802_v25, %v115_v13  ;;  %v437_v13 = vld [vmem:[%s1052_s4 + $0x8] sm:$0xff]  ;;  %v648_v25 = vld [vmem:[%s1054_s6 + $0x7] ss:$0 sm:$0xff] }
 0x211   :  { %v780_v15 = vpack.c.bf16 %v437_v13, %v436_v12 }
 0x212   :  { %v129_v29 = vmul.f32 %v640_v26, %v123_v27  ;;  %v649_v27 = vld [vmem:[%s1054_s6 + $0x8] ss:$0 sm:$0xff] }
 0x214   :  { %v135_v30 = vadd.f32 %v641_v28, %v129_v29 }
 0x216   :  { %v136_v31 = vmax.f32 %v135_v30, 0.0 }
 0x218   :  { %704 = vmatmul.mubr.msk.f32.vlgmr.msra.gmra.mrb[0].mxu1 %vm109_vm2, %v136_v31  ;;  %v442_v31 = vld [vmem:[%s1052_s4 + $0x30] sm:$0xff] }
 0x219   :  { %725 = vmatprep.mubr.msk.f32.mxu1 %vm836_vm0, %v837_v4  ;;  %775 = vmatpush3.bf16.msra.mxu1 %v774_v8 }
 0x21a   :  { %776 = vmatprep.subr.bf16.mxu1 %v835_v2 }
 0x21d   :  { %778 = vmatpush3.bf16.msra.mxu1 %v777_v11 }
 0x21e   :  { %791 = vmatprep.subr.bf16.mxu1 %v835_v2 }
 0x2eb   :  { %v215_v33 = vpop.f32.mrb[0].mxu1 }
 0x2ec   :  { %v216_v34 = vadd.f32 %v642_v32, %v215_v33  ;;  %v705_v35 = vpop.f32.mrb[1].mxu1  ;;  %v443_v32 = vld [vmem:[%s1052_s4 + $0x38] sm:$0xff] }
 0x2ed   :  { %v789_v33 = vpack.c.bf16 %v443_v32, %v442_v31  ;;  %v525_v35 = vld [vmem:[%s1053_s5 + $0x8] sm:$0xff] }
 0x2ee   :  { %v219_v36 = vsel %vm109_vm2, %v216_v34, 0.0 }
 0x2ef   :  { %220 = vadd.xlane.f32.xlu1 %v219_v36 }
 0x37c   :  { %v221_v37 = vpop.xlane.xlu1 %220 }
 0x37d   :  { %v222_v38 = vmul.f32 0.03125, %v221_v37 }
 0x37f   :  { %v223_v39 = vsub.f32 %v216_v34, %v222_v38  ;;  %v524_v34 = vld [vmem:[%s1053_s5] sm:$0xff] }
 0x380   :  { %v792_v36 = vpack.c.bf16 %v525_v35, %v524_v34 }
 0x381   :  { %v224_v40 = vmul.f32 %v223_v39, %v223_v39 }
 0x383   :  { %v225_v41 = vsel %vm109_vm2, %v224_v40, 0.0 }
 0x384   :  { %226 = vadd.xlane.f32.xlu1 %v225_v41  ;;  %v526_v41 = vld [vmem:[%s1053_s5 + $0x10] sm:$0xff]  ;;  %s838_s5 = smov [#allocation2]  }
 0x385   :  { %v795_v43 = vpack.c.bf16 %v527_v42, %v526_v41 }
 0x411   :  { %v227_v48 = vpop.xlane.xlu1 %226 }
 0x412   :  { %v228_v49 = vmul.f32 0.03125, %v227_v48  ;;  %v606_v48 = vlaneseq }
 0x414   :  { %v229_v50 = vadd.f32 1e-05, %v228_v49  ;;  %v607_v49 = vand.u32 127, %v606_v48 }
 0x416   :  { %803 = vrsqrt.f32 %v229_v50  ;;  %v654_v50 = vld [vmem:[%s1054_s6 + $0xb] ss:$0 sm:$0xff]  ;;  %vm608_vm4 = vcmp.lt.s32.totalorder %v607_v49, 4 }
 0x420   :  { %v804_v51 = vpop.eup %803 }
 0x421   :  { %v231_v53 = vmul.f32 %v804_v51, %v223_v39 }
 0x423   :  { %v237_v55 = vmul.f32 %v644_v52, %v231_v53 }
 0x425   :  { %v243_v56 = vadd.f32 %v645_v54, %v237_v55 }
 0x427   :  { %v244_v57 = vmax.f32 %v243_v56, 0.0 }
 0x429   :  { %715 = vmatmul.mubr.msk.f32.vlgmr.msra.gmra.mrb[2].mxu0 %vm109_vm2, %v244_v57 }
 0x42a   :  { %744 = vmatprep.mubr.msk.f32.mxu0 %vm836_vm0, %v837_v4  ;;  %781 = vmatpush3.bf16.msra.mxu0 %v780_v15 }
 0x42b   :  { %782 = vmatprep.subr.bf16.mxu0 %v835_v2 }
 0x42e   :  { %784 = vmatpush3.bf16.msra.mxu0 %v783_v17 }
 0x42f   :  { %785 = vmatprep.subr.bf16.mxu0 %v835_v2 }
 0x432   :  { %787 = vmatpush3.bf16.msra.mxu0 %v786_v20 }
 0x433   :  { %788 = vmatprep.subr.bf16.mxu0 %v835_v2 }
 0x436   :  { %790 = vmatpush3.bf16.msra.mxu0 %v789_v33 }
 0x4fc   :  { %v323_v59 = vpop.f32.mrb[2].mxu0 }
 0x4fd   :  { %v324_v60 = vadd.f32 %v646_v58, %v323_v59  ;;  %v716_v61 = vpop.f32.mrb[3].mxu0 }
 0x4ff   :  { %v327_v62 = vsel %vm109_vm2, %v324_v60, 0.0 }
 0x500   :  { %328 = vadd.xlane.f32.xlu0 %v327_v62 }
 0x58d   :  { %v329_v63 = vpop.xlane.xlu0 %328 }
 0x58e   :  { %v330_v0 = vmul.f32 0.03125, %v329_v63 }
 0x590   :  { %v331_v1 = vsub.f32 %v324_v60, %v330_v0 }
 0x592   :  { %v332_v3 = vmul.f32 %v331_v1, %v331_v1 }
 0x594   :  { %v333_v5 = vsel %vm109_vm2, %v332_v3, 0.0 }
 0x595   :  { %334 = vadd.xlane.f32.xlu1 %v333_v5 }
 0x622   :  { %v335_v21 = vpop.xlane.xlu1 %334 }
 0x623   :  { %v336_v22 = vmul.f32 0.03125, %v335_v21 }
 0x625   :  { %v337_v23 = vadd.f32 1e-05, %v336_v22 }
 0x627   :  { %805 = vrsqrt.f32 %v337_v23 }
 0x631   :  { %v806_v24 = vpop.eup %805 }
 0x632   :  { %v339_v26 = vmul.f32 %v806_v24, %v331_v1 }
 0x634   :  { %v345_v28 = vmul.f32 %v648_v25, %v339_v26 }
 0x636   :  { %v351_v29 = vadd.f32 %v649_v27, %v345_v28 }
 0x638   :  { %v352_v30 = vmax.f32 %v351_v29, 0.0 }
 0x63a   :  { %726 = vmatmul.mubr.msk.f32.vlgmr.msra.gmra.mrb[2].mxu1 %vm109_vm2, %v352_v30 }
 0x63b   :  { %755 = vmatprep.mubr.msk.f32.mxu1 %vm836_vm0, %v837_v4  ;;  %793 = vmatpush3.bf16.msra.mxu1 %v792_v36  ;;  %v650_v4 = vld [vmem:[%s1054_s6 + $0x9] ss:$0 sm:$0xff] }
 0x63c   :  { %794 = vmatprep.subr.bf16.mxu1 %v835_v2  ;;  %v652_v2 = vld [vmem:[%s1054_s6 + $0xa] ss:$0 sm:$0xff]  ;;  %s630_s6 = sshll.u32 %s838_s5, 4  ;;  %s631_s6 = int_to_ptr.vmem [resolvable:$true] %s630_s6 }
 0x63d   :  { %s811_s3 = scalar_lea.vmem %s631_s6, 128  ;;  %p816_p1 = scmp.lt.s32.totalorder %s631_s6, %s631_s6 }
 0x63e   :  { %p812_p0 = scmp.ne.s32.totalorder %s631_s6, %s811_s3  ;;  %p817_p2 = scmp.lt.s32.totalorder %s811_s3, %s811_s3 }
 0x63f   :  { %796 = vmatpush3.bf16.msra.mxu1 %v795_v43 }
 0x640   :  { %p818_p3 = por %p817_p2, %p816_p1 }
 0x642   :  { %p819_p4 = pnand %p818_p3, %p812_p0 }
 0x70d   :  { %v431_v37 = vpop.f32.mrb[2].mxu1 }
 0x70e   :  { %v432_v38 = vadd.f32 %v650_v4, %v431_v37  ;;  %v727_v39 = vpop.f32.mrb[3].mxu1 }
 0x710   :  { %v435_v40 = vmax.f32 %v432_v38, 0.0 }
 0x712   :  { %745 = vmatmul.mubr.msk.f32.vlgmr.msra.gmra.mrb[4].mxu0 %vm449_vm3, %v435_v40 }
 0x7e5   :  { %v519_v44 = vpop.f32.mrb[4].mxu0 }
 0x7e6   :  { %v520_v45 = vadd.f32 %v652_v2, %v519_v44  ;;  %v746_v46 = vpop.f32.mrb[5].mxu0 }
 0x7e8   :  { %v523_v47 = vmax.f32 %v520_v45, 0.0 }
 0x7ea   :  { %756 = vmatmul.mubr.msk.f32.vlgmr.msra.gmra.mrb[4].mxu1 %vm109_vm2, %v523_v47 }
 0x8bd   :  { %v602_v51 = vpop.f32.mrb[4].mxu1 }
 0x8be   :  { %v603_v52 = vadd.f32 %v654_v50, %v602_v51  ;;  %v757_v53 = vpop.f32.mrb[5].mxu1 }
 0x8c0   :  { %v609_v54 = vsel %vm608_vm4, %v603_v52, -inf }
 0x8c1   :  { %v611_v55 = vsel %vm610_vm5, %v609_v54, -inf }
 0x8c2   :  { %612 = vmax.xlane.f32.xlu0 %v611_v55 }
 0x94f   :  { %v613_v56 = vpop.xlane.xlu0 %612 }
 0x950   :  { %v614_v57 = vsub.f32 %v609_v54, %v613_v56 }
 0x952   :  { %v615_v58 = vmul.f32 1.442695, %v614_v57 }
 0x954   :  { %807 = vpow2.f32 %v615_v58 }
 0x95e   :  { %v808_v59 = vpop.eup %807 }
 0x95f   :  { %v617_v60 = vsel %vm610_vm5, %v808_v59, 0.0 }
 0x960   :  { %618 = vadd.xlane.f32.xlu1 %v617_v60 }
 0x9ed   :  { %v619_v61 = vpop.xlane.xlu1 %618 }
 0x9ee   :  { %809 = vrcp.f32 %v619_v61 }
 0x9f8   :  { %v810_v62 = vpop.eup %809 }
 0x9f9   :  { %v621_v63 = vmul.f32 %v810_v62, %v808_v59 }
 0x9fb   :  { %v622_v0 = vsel %vm608_vm4, %v621_v63, %v603_v52 }
 0x9fc   :  { %623 = vst.msk [vmem:[#allocation2] sm:$0xff] %vm610_vm5, %v622_v0 }
 0x9fd   :  { %822 = shalt.err (!%p819_p4)
}
 0x9fe   :  { %s823_s25 = scalar_lea.hbm %s1055_s7, 128 }
 0x9ff   :  { %p824_p5 = scmp.ne.s32.totalorder %s1055_s7, %s823_s25  ;;  %p827_p6 = scmp.lt.u32.totalorder %s823_s25, %s1055_s7 }
 0xa01   :  { %p829_p7 = pnand %p827_p6, %p824_p5 }
 0xa03   :  { %832 = shalt.err (!%p829_p7)
}
 0xa04   :  { %633 = dma.vmem_to_hbm [thread:$0]  %s631_s6, 128, %s1055_s7, [#allocation3]  }
 0xa05   :  { %833 = dma.done.wait [#allocation3], 128  }
 0xa06   :  { %834 = vsyncadd [#allocation3], 4294967168 }
 0xa07   :  { %637 = vsyncpa [#allocation3], 1 }

</bundles_post_ra>
